<compile_context>
chip_gen: v7x
topology: tpu7x:2x2x1
jax: 0.10.0
libtpu: 0.0.40
codegen_flags: <defaults>
</compile_context>

<pallas_src>
import jax
import jax.numpy as jnp
from jax.experimental import pallas as pl
from jax.experimental.pallas import tpu as pltpu

HIDDEN_SIZE = 256
NUM_OF_LINKS = 6
N_ACTIONS = NUM_OF_LINKS
MAX_DEADLINE = 10
N_STATES = NUM_OF_LINKS * (MAX_DEADLINE + 3)   # 78
BOUND = 20.0

PAD_ACTIONS = 128                               # lane-dense action head

# Dropping the softmax max-subtraction is only valid while exp(BOUND) (times a
# few lanes) fits comfortably in f32. Guard it statically.
assert BOUND <= 80.0, "softmax w/o max-subtraction needs exp(BOUND) to fit f32"


def _round_up(x, m):
    return ((x + m - 1) // m) * m


def _cdiv(a, b):
    return -(-a // b)


def actor_kernel(x_ref, w1_ref, b1_ref, w2_ref, b2_ref, w3_ref, b3_ref,
                 mask_ref, out_ref):
    # layer1 + ReLU  (bf16 MXU inputs, f32 accumulation, f32 bias)
    x = x_ref[...].astype(jnp.bfloat16)
    h1 = jnp.dot(x, w1_ref[...], preferred_element_type=jnp.float32) + b1_ref[...]
    h1 = jnp.maximum(h1, 0.0).astype(jnp.bfloat16)

    # layer2 + ReLU
    h2 = jnp.dot(h1, w2_ref[...], preferred_element_type=jnp.float32) + b2_ref[...]
    h2 = jnp.maximum(h2, 0.0).astype(jnp.bfloat16)

    # action head (padded to 128 output lanes) + clamp
    z = jnp.dot(h2, w3_ref[...], preferred_element_type=jnp.float32) + b3_ref[...]
    z = jnp.clip(z, -BOUND, BOUND)

    # Softmax over the first N_ACTIONS lanes. z is clamped to [-BOUND, BOUND],
    # so exp() is safe in f32 without max-subtraction (saves an XLU reduce).
    # Pad lanes are zeroed by the resident constant mask.
    e = jnp.exp(z) * mask_ref[...]
    s = jnp.sum(e, axis=-1, keepdims=True)

    # EUP approximate reciprocal + one Newton step (full f32 accuracy, no divide).
    r = pl.reciprocal(s, approx=True)
    r = r * (2.0 - s * r)
    out_ref[...] = e * r


def prepare_params(params):
    """One-time packing of the raw (f32, unpadded) params for the kernel.

    Hoists out of the per-call path: zero-padding the action head to 128
    lanes, the softmax lane mask, and the bf16 weight casts.
    """
    w1, b1, w2, b2, w3, b3 = params
    w3p = jnp.zeros((HIDDEN_SIZE, PAD_ACTIONS), jnp.float32).at[:, :N_ACTIONS].set(w3)
    b3p = jnp.zeros((1, PAD_ACTIONS), jnp.float32).at[:, :N_ACTIONS].set(b3)
    mask = (jnp.arange(PAD_ACTIONS) < N_ACTIONS).astype(jnp.float32)[None, :]
    return (
        w1.astype(jnp.bfloat16), b1.astype(jnp.float32),
        w2.astype(jnp.bfloat16), b2.astype(jnp.float32),
        w3p.astype(jnp.bfloat16), b3p.astype(jnp.float32),
        mask,
    )


def _choose_tiling(B, tb_max):
    """Balanced batch tiling: minimal last-tile waste, >=2 tiles when B is
    large enough so the 'parallel' axis spans both v7x TensorCores."""
    n_tiles = max(1, _cdiv(B, tb_max))
    if n_tiles == 1 and B >= 16:
        n_tiles = 2
    tb = _round_up(_cdiv(B, n_tiles), 8)
    return tb, n_tiles


def actor_forward(x, prepared, *, tb_max=1024):
    """x: (B, N_STATES) f32; prepared: output of prepare_params()."""
    w1, b1, w2, b2, w3p, b3p, mask = prepared
    B = x.shape[0]

    tb, n_tiles = _choose_tiling(B, tb_max)
    bp = tb * n_tiles
    if bp != B:
        x = jnp.pad(x, ((0, bp - B), (0, 0)))

    out = pl.pallas_call(
        actor_kernel,
        out_shape=jax.ShapeDtypeStruct((bp, PAD_ACTIONS), jnp.float32),
        grid=(n_tiles,),
        in_specs=[
            pl.BlockSpec((tb, N_STATES), lambda i: (i, 0)),              # x tile
            pl.BlockSpec((N_STATES, HIDDEN_SIZE), lambda i: (0, 0)),     # W1 (resident, bf16)
            pl.BlockSpec((1, HIDDEN_SIZE), lambda i: (0, 0)),            # b1 (f32)
            pl.BlockSpec((HIDDEN_SIZE, HIDDEN_SIZE), lambda i: (0, 0)),  # W2 (resident, bf16)
            pl.BlockSpec((1, HIDDEN_SIZE), lambda i: (0, 0)),            # b2 (f32)
            pl.BlockSpec((HIDDEN_SIZE, PAD_ACTIONS), lambda i: (0, 0)),  # W3 (padded, bf16)
            pl.BlockSpec((1, PAD_ACTIONS), lambda i: (0, 0)),            # b3 (padded, f32)
            pl.BlockSpec((1, PAD_ACTIONS), lambda i: (0, 0)),            # lane mask (f32)
        ],
        out_specs=pl.BlockSpec((tb, PAD_ACTIONS), lambda i: (i, 0)),
        compiler_params=pltpu.CompilerParams(
            dimension_semantics=("parallel",),
            # ~3-4 MB at tb=1024 (x/out double-buffered + resident bf16
            # weights + h1/h2 intermediates); leaves large headroom even on
            # v7x's 64 MiB VMEM.
            vmem_limit_bytes=32 * 1024 * 1024,
        ),
    )(x, w1, b1, w2, b2, w3p, b3p, mask)

    return out[:B, :N_ACTIONS]


def init_params(key):
    """Deterministic synthetic init mirroring the PyTorch shapes.

    Weights ~ Normal(0, 0.02) (as in __init__); biases use PyTorch's default
    Linear bias init U(-1/sqrt(fan_in), 1/sqrt(fan_in)). Stored as (in, out).
    """
    k = jax.random.split(key, 6)
    w1 = 0.02 * jax.random.normal(k[0], (N_STATES, HIDDEN_SIZE), jnp.float32)
    b1 = jax.random.uniform(k[1], (1, HIDDEN_SIZE), jnp.float32,
                            -1.0 / jnp.sqrt(N_STATES), 1.0 / jnp.sqrt(N_STATES))
    w2 = 0.02 * jax.random.normal(k[2], (HIDDEN_SIZE, HIDDEN_SIZE), jnp.float32)
    b2 = jax.random.uniform(k[3], (1, HIDDEN_SIZE), jnp.float32,
                            -1.0 / jnp.sqrt(HIDDEN_SIZE), 1.0 / jnp.sqrt(HIDDEN_SIZE))
    w3 = 0.02 * jax.random.normal(k[4], (HIDDEN_SIZE, N_ACTIONS), jnp.float32)
    b3 = jax.random.uniform(k[5], (1, N_ACTIONS), jnp.float32,
                            -1.0 / jnp.sqrt(HIDDEN_SIZE), 1.0 / jnp.sqrt(HIDDEN_SIZE))
    return w1, b1, w2, b2, w3, b3


def reference_forward(x, params):
    w1, b1, w2, b2, w3, b3 = params
    h1 = jnp.maximum(x @ w1 + b1, 0.0)
    h2 = jnp.maximum(h1 @ w2 + b2, 0.0)
    z = jnp.clip(h2 @ w3 + b3, -BOUND, BOUND)
    return jax.nn.softmax(z, axis=-1)


if __name__ == "__main__":
    key = jax.random.PRNGKey(0)
    kx, kp, kx2 = jax.random.split(key, 3)
    params = init_params(kp)
    prepared = prepare_params(params)      # one-time: pad head, cast to bf16, mask

    # bf16 matmul inputs (f32 accumulation) vs. the f32 reference: relax tol.
    ATOL = 1e-2

    # Small deployment-style batch (single tile).
    B = 8
    x = jax.random.normal(kx, (B, N_STATES), jnp.float32)
    out = jax.block_until_ready(actor_forward(x, prepared))
    ref = reference_forward(x, params)
    assert out.shape == (B, N_ACTIONS)
    assert jnp.allclose(out, ref, atol=ATOL, rtol=ATOL)
    assert jnp.allclose(jnp.sum(out, axis=-1), 1.0, atol=1e-3)

    # Larger batch exercising the adaptive tiling (B=300 -> 2 tiles of 152,
    # only 4 padded rows) and multi-step grid.
    B2 = 300
    x2 = jax.random.normal(kx2, (B2, N_STATES), jnp.float32)
    out2 = jax.block_until_ready(actor_forward(x2, prepared))
    ref2 = reference_forward(x2, params)
    assert out2.shape == (B2, N_ACTIONS)
    assert jnp.allclose(out2, ref2, atol=ATOL, rtol=ATOL)
    assert jnp.allclose(jnp.sum(out2, axis=-1), 1.0, atol=1e-3)

    print("KERNEL_OK")
</pallas_src>

<mosaic_0001>
module attributes {stable_mosaic.version = 11 : i64} {
  func.func @actor_kernel(%arg0: i32, %arg1: memref<8x78xf32, #tpu.memory_space<vmem>>, %arg2: memref<78x256xbf16, #tpu.memory_space<vmem>>, %arg3: memref<1x256xf32, #tpu.memory_space<vmem>>, %arg4: memref<256x256xbf16, #tpu.memory_space<vmem>>, %arg5: memref<1x256xf32, #tpu.memory_space<vmem>>, %arg6: memref<256x128xbf16, #tpu.memory_space<vmem>>, %arg7: memref<1x128xf32, #tpu.memory_space<vmem>>, %arg8: memref<1x128xf32, #tpu.memory_space<vmem>>, %arg9: memref<8x128xf32, #tpu.memory_space<vmem>>) attributes {dimension_semantics = [#tpu.dimension_semantics<parallel>], iteration_bounds = array<i64: 1>, scalar_prefetch = 0 : i64, scratch_operands = 0 : i64, tpu.core_type = #tpu.core_type<tc>, window_params = [{transform_indices = @transform_0, window_bounds = array<i64: 8, 78>}, {pipeline_mode = #tpu.pipeline_mode<synchronous>, transform_indices = @transform_1, window_bounds = array<i64: 78, 256>}, {pipeline_mode = #tpu.pipeline_mode<synchronous>, transform_indices = @transform_2, window_bounds = array<i64: 1, 256>}, {pipeline_mode = #tpu.pipeline_mode<synchronous>, transform_indices = @transform_3, window_bounds = array<i64: 256, 256>}, {pipeline_mode = #tpu.pipeline_mode<synchronous>, transform_indices = @transform_4, window_bounds = array<i64: 1, 256>}, {pipeline_mode = #tpu.pipeline_mode<synchronous>, transform_indices = @transform_5, window_bounds = array<i64: 256, 128>}, {pipeline_mode = #tpu.pipeline_mode<synchronous>, transform_indices = @transform_6, window_bounds = array<i64: 1, 128>}, {pipeline_mode = #tpu.pipeline_mode<synchronous>, transform_indices = @transform_7, window_bounds = array<i64: 1, 128>}, {transform_indices = @transform_8, window_bounds = array<i64: 8, 128>}]} {
    %c0 = arith.constant 0 : index
    %c0_0 = arith.constant 0 : index
    %0 = vector.load %arg1[%c0, %c0_0] : memref<8x78xf32, #tpu.memory_space<vmem>>, vector<8x78xf32>
    %1 = arith.truncf %0 : vector<8x78xf32> to vector<8x78xbf16>
    %c0_1 = arith.constant 0 : index
    %c0_2 = arith.constant 0 : index
    %2 = vector.load %arg2[%c0_1, %c0_2] : memref<78x256xbf16, #tpu.memory_space<vmem>>, vector<78x256xbf16>
    %cst = arith.constant dense<0.000000e+00> : vector<8x256xf32>
    %3 = tpu.matmul %1, %2, %cst {dimension_numbers = #tpu.dot_dimension_numbers<[1], [0], [0], [1], [0, 0, 1, 1], [], []>} : vector<8x78xbf16>, vector<78x256xbf16>, vector<8x256xf32> -> vector<8x256xf32>
    %c0_3 = arith.constant 0 : index
    %c0_4 = arith.constant 0 : index
    %4 = vector.load %arg3[%c0_3, %c0_4] : memref<1x256xf32, #tpu.memory_space<vmem>>, vector<1x256xf32>
    %5 = vector.broadcast %4 : vector<1x256xf32> to vector<8x256xf32>
    %6 = arith.addf %3, %5 : vector<8x256xf32>
    %cst_5 = arith.constant 0.000000e+00 : f32
    %7 = vector.broadcast %cst_5 : f32 to vector<8x256xf32>
    %8 = arith.maximumf %6, %7 : vector<8x256xf32>
    %9 = arith.truncf %8 : vector<8x256xf32> to vector<8x256xbf16>
    %c0_6 = arith.constant 0 : index
    %c0_7 = arith.constant 0 : index
    %10 = vector.load %arg4[%c0_6, %c0_7] : memref<256x256xbf16, #tpu.memory_space<vmem>>, vector<256x256xbf16>
    %cst_8 = arith.constant dense<0.000000e+00> : vector<8x256xf32>
    %11 = tpu.matmul %9, %10, %cst_8 {dimension_numbers = #tpu.dot_dimension_numbers<[1], [0], [0], [1], [0, 0, 1, 1], [], []>} : vector<8x256xbf16>, vector<256x256xbf16>, vector<8x256xf32> -> vector<8x256xf32>
    %c0_9 = arith.constant 0 : index
    %c0_10 = arith.constant 0 : index
    %12 = vector.load %arg5[%c0_9, %c0_10] : memref<1x256xf32, #tpu.memory_space<vmem>>, vector<1x256xf32>
    %13 = vector.broadcast %12 : vector<1x256xf32> to vector<8x256xf32>
    %14 = arith.addf %11, %13 : vector<8x256xf32>
    %cst_11 = arith.constant 0.000000e+00 : f32
    %15 = vector.broadcast %cst_11 : f32 to vector<8x256xf32>
    %16 = arith.maximumf %14, %15 : vector<8x256xf32>
    %17 = arith.truncf %16 : vector<8x256xf32> to vector<8x256xbf16>
    %c0_12 = arith.constant 0 : index
    %c0_13 = arith.constant 0 : index
    %18 = vector.load %arg6[%c0_12, %c0_13] : memref<256x128xbf16, #tpu.memory_space<vmem>>, vector<256x128xbf16>
    %cst_14 = arith.constant dense<0.000000e+00> : vector<8x128xf32>
    %19 = tpu.matmul %17, %18, %cst_14 {dimension_numbers = #tpu.dot_dimension_numbers<[1], [0], [0], [1], [0, 0, 1, 1], [], []>} : vector<8x256xbf16>, vector<256x128xbf16>, vector<8x128xf32> -> vector<8x128xf32>
    %c0_15 = arith.constant 0 : index
    %c0_16 = arith.constant 0 : index
    %20 = vector.load %arg7[%c0_15, %c0_16] : memref<1x128xf32, #tpu.memory_space<vmem>>, vector<1x128xf32>
    %21 = vector.broadcast %20 : vector<1x128xf32> to vector<8x128xf32>
    %22 = arith.addf %19, %21 : vector<8x128xf32>
    %cst_17 = arith.constant -2.000000e+01 : f32
    %cst_18 = arith.constant 2.000000e+01 : f32
    %23 = vector.broadcast %cst_17 : f32 to vector<8x128xf32>
    %24 = arith.maximumf %23, %22 : vector<8x128xf32>
    %25 = vector.broadcast %cst_18 : f32 to vector<8x128xf32>
    %26 = arith.minimumf %25, %24 : vector<8x128xf32>
    %27 = math.exp %26 : vector<8x128xf32>
    %c0_19 = arith.constant 0 : index
    %c0_20 = arith.constant 0 : index
    %28 = vector.load %arg8[%c0_19, %c0_20] : memref<1x128xf32, #tpu.memory_space<vmem>>, vector<1x128xf32>
    %29 = vector.broadcast %28 : vector<1x128xf32> to vector<8x128xf32>
    %30 = arith.mulf %27, %29 : vector<8x128xf32>
    %cst_21 = arith.constant dense<0.000000e+00> : vector<8xf32>
    %31 = vector.multi_reduction <add>, %30, %cst_21 [1] : vector<8x128xf32> to vector<8xf32>
    %32 = vector.shape_cast %31 : vector<8xf32> to vector<8x1xf32>
    %33 = tpu.reciprocal %32 {approx = true} : vector<8x1xf32> -> vector<8x1xf32>
    %34 = arith.mulf %32, %33 : vector<8x1xf32>
    %cst_22 = arith.constant 2.000000e+00 : f32
    %35 = vector.broadcast %cst_22 : f32 to vector<8x1xf32>
    %36 = arith.subf %35, %34 : vector<8x1xf32>
    %37 = arith.mulf %33, %36 : vector<8x1xf32>
    %38 = vector.broadcast %37 : vector<8x1xf32> to vector<8x128xf32>
    %39 = arith.mulf %30, %38 : vector<8x128xf32>
    %c0_23 = arith.constant 0 : index
    %c0_24 = arith.constant 0 : index
    %40 = vector.load %arg9[%c0_23, %c0_24] : memref<8x128xf32, #tpu.memory_space<vmem>>, vector<8x128xf32>
    tpu.vector_store %arg9[%c0_23, %c0_24], %39 {strides = array<i32>} : memref<8x128xf32, #tpu.memory_space<vmem>>, vector<8x128xf32>,
    return
  }
  func.func @transform_0(%arg0: i32) -> (i32, i32) {
    %c0_i32 = arith.constant 0 : i32
    %c0_i32_0 = arith.constant 0 : i32
    return %arg0, %c0_i32 : i32, i32
  }
  func.func @transform_1(%arg0: i32) -> (i32, i32) {
    %c0_i32 = arith.constant 0 : i32
    %c0_i32_0 = arith.constant 0 : i32
    %c0_i32_1 = arith.constant 0 : i32
    return %c0_i32, %c0_i32_0 : i32, i32
  }
  func.func @transform_2(%arg0: i32) -> (i32, i32) {
    %c0_i32 = arith.constant 0 : i32
    %c0_i32_0 = arith.constant 0 : i32
    %c0_i32_1 = arith.constant 0 : i32
    return %c0_i32, %c0_i32_0 : i32, i32
  }
  func.func @transform_3(%arg0: i32) -> (i32, i32) {
    %c0_i32 = arith.constant 0 : i32
    %c0_i32_0 = arith.constant 0 : i32
    %c0_i32_1 = arith.constant 0 : i32
    return %c0_i32, %c0_i32_0 : i32, i32
  }
  func.func @transform_4(%arg0: i32) -> (i32, i32) {
    %c0_i32 = arith.constant 0 : i32
    %c0_i32_0 = arith.constant 0 : i32
    %c0_i32_1 = arith.constant 0 : i32
    return %c0_i32, %c0_i32_0 : i32, i32
  }
  func.func @transform_5(%arg0: i32) -> (i32, i32) {
    %c0_i32 = arith.constant 0 : i32
    %c0_i32_0 = arith.constant 0 : i32
    %c0_i32_1 = arith.constant 0 : i32
    return %c0_i32, %c0_i32_0 : i32, i32
  }
  func.func @transform_6(%arg0: i32) -> (i32, i32) {
    %c0_i32 = arith.constant 0 : i32
    %c0_i32_0 = arith.constant 0 : i32
    %c0_i32_1 = arith.constant 0 : i32
    return %c0_i32, %c0_i32_0 : i32, i32
  }
  func.func @transform_7(%arg0: i32) -> (i32, i32) {
    %c0_i32 = arith.constant 0 : i32
    %c0_i32_0 = arith.constant 0 : i32
    %c0_i32_1 = arith.constant 0 : i32
    return %c0_i32, %c0_i32_0 : i32, i32
  }
  func.func @transform_8(%arg0: i32) -> (i32, i32) {
    %c0_i32 = arith.constant 0 : i32
    %c0_i32_0 = arith.constant 0 : i32
    return %arg0, %c0_i32 : i32, i32
  }
}

</mosaic_0001>

<bundles_post_ra>
// kernel: tpu_custom_call.1
= control target key start
LH: loop header
LB: loop body
LE: loop exit
PB: predicated region body
PF: predicated region fallthrough
CT: control target
= control target key end

     0   :  { %13 = vsyncpa [#allocation3], 0  ;;  %s1102_s0 = inlined_call_operand.hbm [shape: f32[8,78], index: 0, kind: input, shape index: {}]   ;;  %s1103_s1 = inlined_call_operand.hbm [shape: bf16[78,256], index: 1, kind: input, shape index: {}]   ;;  %s1104_s2 = inlined_call_operand.vmem [shape: f32[1,256], index: 2, kind: input, shape index: {}]   ;;  %s1105_s3 = inlined_call_operand.hbm [shape: bf16[256,256], index: 3, kind: input, shape index: {}]   ;;  %s1106_s4 = inlined_call_operand.vmem [shape: f32[1,256], index: 4, kind: input, shape index: {}]   ;;  %s1107_s5 = inlined_call_operand.hbm [shape: bf16[256,128], index: 5, kind: input, shape index: {}]   ;;  %s1108_s6 = inlined_call_operand.vmem [shape: f32[1,128], index: 6, kind: input, shape index: {}]   ;;  %s1109_s7 = inlined_call_operand.vmem [shape: f32[1,128], index: 7, kind: input, shape index: {}]   ;;  %s1110_s8 = inlined_call_operand.hbm [shape: f32[8,128], index: 8, kind: output, shape index: {}]  }
   0x1   :  { %14 = vsyncpa [#allocation6], 0 }
   0x2   :  { %15 = vsyncpa [#allocation9], 0 }
   0x3   :  { %16 = vsyncpa [#allocation4], 0  ;;  %s969_s27 = smov [#allocation5]   ;;  %s851_s9 = scalar_lea.hbm %s1103_s1, 1280 }
   0x4   :  { %s32_s28 = sshll.u32 %s969_s27, 4  ;;  %p852_p0 = scmp.ne.s32.totalorder %s1103_s1, %s851_s9  ;;  %s33_s28 = int_to_ptr.vmem [resolvable:$true] %s32_s28 }
   0x5   :  { %p855_p1 = scmp.lt.u32.totalorder %s851_s9, %s1103_s1 }
   0x7   :  { %p857_p2 = pnand %p855_p1, %p852_p0 }
   0x9   :  { %860 = shalt.err (!%p857_p2)
}
   0xa   :  { %s861_s14 = scalar_lea.vmem %s33_s28, 1280  ;;  %p866_p4 = scmp.lt.s32.totalorder %s33_s28, %s33_s28 }
   0xb   :  { %p862_p3 = scmp.ne.s32.totalorder %s33_s28, %s861_s14  ;;  %p867_p5 = scmp.lt.s32.totalorder %s861_s14, %s861_s14 }
   0xd   :  { %p868_p6 = por %p867_p5, %p866_p4 }
   0xf   :  { %p869_p7 = pnand %p868_p6, %p862_p3 }
  0x11   :  { %872 = shalt.err (!%p869_p7)
}
  0x12   :  { %s970_s15 = smov 128   ;;  %s971_s16 = smov 8  }
  0x13   :  { %38 = dma.hbm_to_vmem [thread:$0]  %s1103_s1, 1280, %s33_s28, [#allocation6], %s970_s15, %s970_s15, %s971_s16  }
  0x14   :  { %s972_s19 = smov [#allocation2]   ;;  %s973_s21 = smov [#allocation7]  }
  0x15   :  { %s23_s20 = sshll.u32 %s972_s19, 4  ;;  %s46_s22 = sshll.u32 %s973_s21, 4  ;;  %s24_s20 = int_to_ptr.vmem [resolvable:$true] %s23_s20  ;;  %s47_s22 = int_to_ptr.vmem [resolvable:$true] %s46_s22 }
  0x16   :  { %s873_s25 = scalar_lea.hbm %s1102_s0, 128 }
  0x17   :  { %p874_p8 = scmp.ne.s32.totalorder %s1102_s0, %s873_s25  ;;  %p877_p9 = scmp.lt.u32.totalorder %s873_s25, %s1102_s0 }
  0x19   :  { %p879_p10 = pnand %p877_p9, %p874_p8 }
  0x1b   :  { %882 = shalt.err (!%p879_p10)
}
  0x1c   :  { %s883_s1 = scalar_lea.vmem %s24_s20, 128  ;;  %p888_p12 = scmp.lt.s32.totalorder %s24_s20, %s24_s20 }
  0x1d   :  { %p884_p11 = scmp.ne.s32.totalorder %s24_s20, %s883_s1  ;;  %p889_p13 = scmp.lt.s32.totalorder %s883_s1, %s883_s1 }
  0x1f   :  { %p890_p0 = por %p889_p13, %p888_p12 }
  0x21   :  { %p891_p1 = pnand %p890_p0, %p884_p11 }
  0x23   :  { %894 = shalt.err (!%p891_p1)
}
  0x24   :  { %26 = dma.hbm_to_vmem [thread:$0]  %s1102_s0, 128, %s24_s20, [#allocation3]  }
  0x25   :  { %s895_s12 = scalar_lea.hbm %s1105_s3, 4096 }
  0x26   :  { %p896_p2 = scmp.ne.s32.totalorder %s1105_s3, %s895_s12  ;;  %p899_p3 = scmp.lt.u32.totalorder %s895_s12, %s1105_s3 }
  0x28   :  { %p901_p4 = pnand %p899_p3, %p896_p2 }
  0x2a   :  { %904 = shalt.err (!%p901_p4)
}
  0x2b   :  { %s905_s19 = scalar_lea.vmem %s47_s22, 4096  ;;  %p910_p6 = scmp.lt.s32.totalorder %s47_s22, %s47_s22 }
  0x2c   :  { %p906_p5 = scmp.ne.s32.totalorder %s47_s22, %s905_s19  ;;  %p911_p7 = scmp.lt.s32.totalorder %s905_s19, %s905_s19 }
  0x2e   :  { %p912_p8 = por %p911_p7, %p910_p6 }
  0x30   :  { %p913_p9 = pnand %p912_p8, %p906_p5 }
  0x32   :  { %916 = shalt.err (!%p913_p9)
}
  0x33   :  { %52 = dma.hbm_to_vmem [thread:$0]  %s1105_s3, 4096, %s47_s22, [#allocation6], %s970_s15, %s970_s15, %s971_s16  }
  0x34   :  { %s974_s21 = smov [#allocation8]   ;;  %s917_s26 = scalar_lea.hbm %s1107_s5, 2048 }
  0x35   :  { %s60_s23 = sshll.u32 %s974_s21, 4  ;;  %p918_p10 = scmp.ne.s32.totalorder %s1107_s5, %s917_s26  ;;  %s61_s23 = int_to_ptr.vmem [resolvable:$true] %s60_s23 }
  0x36   :  { %p921_p11 = scmp.lt.u32.totalorder %s917_s26, %s1107_s5 }
  0x38   :  { %p923_p12 = pnand %p921_p11, %p918_p10 }
  0x3a   :  { %926 = shalt.err (!%p923_p12)
}
  0x3b   :  { %s927_s28 = scalar_lea.vmem %s61_s23, 2048  ;;  %p932_p0 = scmp.lt.s32.totalorder %s61_s23, %s61_s23 }
  0x3c   :  { %p928_p13 = scmp.ne.s32.totalorder %s61_s23, %s927_s28  ;;  %p933_p1 = scmp.lt.s32.totalorder %s927_s28, %s927_s28 }
  0x3e   :  { %p934_p2 = por %p933_p1, %p932_p0 }
  0x40   :  { %p935_p3 = pnand %p934_p2, %p928_p13 }
  0x42   :  { %938 = shalt.err (!%p935_p3)
}
  0x43   :  { %s975_s3 = smov 64   ;;  %s976_s15 = smov 4  }
  0x44   :  { %66 = dma.hbm_to_vmem [thread:$0]  %s1107_s5, 2048, %s61_s23, [#allocation9], %s975_s3, %s975_s3, %s976_s15  }
  0x45   :  { %961 = dma.done.wait [#allocation3], 128  }
  0x46   :  { %962 = vsyncadd [#allocation3], 4294967168 }
  0x47   :  { %963 = dma.done.wait [#allocation6], 5376  }
  0x48   :  { %964 = vsyncadd [#allocation6], 4294961920 }
  0x49   :  { %965 = dma.done.wait [#allocation9], 2048  }
  0x4a   :  { %966 = vsyncadd [#allocation9], 4294965248  ;;  %v977_v0 = vmov 0   ;;  %v768_v1 = vld [vmem:[#allocation5 + $0x4] ss:$8 sps:$4 sm:$0xff]   ;;  %vm160_vm0 = vcmask 1046528   ;;  %v98_v58 = vlaneseq }
  0x4b   :  { %199 = vmatprep.mubr.bf16.mxu0 %v977_v0  ;;  %v770_v2 = vld [vmem:[#allocation5] ss:$8 sps:$4 sm:$0xff]   ;;  %167 = vmatprep.subr.bf16.mxu0 %v768_v1  ;;  %v771_v3 = vld [vmem:[#allocation5 + $0x14] ss:$8 sps:$4 sm:$0xff]   ;;  %v773_v4 = vld [vmem:[#allocation5 + $0x10] ss:$8 sps:$4 sm:$0xff]  }
  0x4c   :  { %168 = vmatpush1.bf16.msra.mxu0 %v770_v2  ;;  %v774_v5 = vld [vmem:[#allocation5 + $0x24] ss:$8 sps:$4 sm:$0xff]   ;;  %v776_v6 = vld [vmem:[#allocation5 + $0x20] ss:$8 sps:$4 sm:$0xff]   ;;  %v777_v7 = vld [vmem:[#allocation5 + $0x34] ss:$8 sps:$4 sm:$0xff]  }
  0x4d   :  { %169 = vmatprep.subr.bf16.mxu0 %v771_v3  ;;  %v783_v8 = vld [vmem:[#allocation7 + $0x4] ss:$8 sps:$4 sm:$0xff]   ;;  %v785_v9 = vld [vmem:[#allocation7] ss:$8 sps:$4 sm:$0xff]   ;;  %v786_v11 = vld [vmem:[#allocation7 + $0x14] ss:$8 sps:$4 sm:$0xff]  }
  0x4e   :  { %v779_v10 = vld [vmem:[#allocation5 + $0x30] ss:$8 sps:$4 sm:$0xff]   ;;  %v780_v12 = vld [vmem:[#allocation5 + $0x44] ss:$8 sps:$4 sm:$0x7f]   ;;  %416 = vmatprep.subr.bf16.mxu1 %v783_v8  ;;  %vm156_vm1 = vcmask 637952  }
  0x4f   :  { %417 = vmatpush1.bf16.msra.mxu1 %v785_v9  ;;  %v788_v13 = vld [vmem:[#allocation7 + $0x10] ss:$8 sps:$4 sm:$0xff]   ;;  %v789_v15 = vld [vmem:[#allocation7 + $0x24] ss:$8 sps:$4 sm:$0xff]   ;;  %v791_v17 = vld [vmem:[#allocation7 + $0x20] ss:$8 sps:$4 sm:$0xff]  }
  0x50   :  { %170 = vmatpush1.bf16.msra.mxu0 %v773_v4  ;;  %v782_v14 = vld [vmem:[#allocation5 + $0x40] ss:$8 sps:$4 sm:$0x7f]   ;;  %418 = vmatprep.subr.bf16.mxu1 %v786_v11  ;;  %v84_v16 = vld [vmem:[#allocation2] sm:$0xff]  ;;  %v792_v19 = vld [vmem:[#allocation7 + $0x34] ss:$8 sps:$4 sm:$0xff]  }
  0x51   :  { %171 = vmatprep.subr.bf16.mxu0 %v774_v5  ;;  %v162_v18 = vsel %vm160_vm0, %v782_v14, 0  ;;  %v85_v20 = vpack.c.bf16 %v84_v16, %v84_v16  ;;  %v794_v21 = vld [vmem:[#allocation7 + $0x30] ss:$8 sps:$4 sm:$0xff]   ;;  %v795_v22 = vld [vmem:[#allocation7 + $0x44] ss:$8 sps:$4 sm:$0xff]   ;;  %v99_v59 = vshrl.u32 %v98_v58, 7 }
  0x52   :  { %v797_v23 = vld [vmem:[#allocation7 + $0x40] ss:$8 sps:$4 sm:$0xff]   ;;  %v798_v24 = vld [vmem:[#allocation7 + $0x54] ss:$8 sps:$4 sm:$0xff]   ;;  %v800_v25 = vld [vmem:[#allocation7 + $0x50] ss:$8 sps:$4 sm:$0xff]  }
  0x53   :  { %419 = vmatpush1.bf16.msra.mxu1 %v788_v13  ;;  %v801_v26 = vld [vmem:[#allocation7 + $0x64] ss:$8 sps:$4 sm:$0xff]   ;;  %v803_v27 = vld [vmem:[#allocation7 + $0x60] ss:$8 sps:$4 sm:$0xff]   ;;  %v804_v28 = vld [vmem:[#allocation7 + $0x74] ss:$8 sps:$4 sm:$0xff]  }
  0x54   :  { %172 = vmatpush1.bf16.msra.mxu0 %v776_v6  ;;  %420 = vmatprep.subr.bf16.mxu1 %v789_v15  ;;  %v806_v29 = vld [vmem:[#allocation7 + $0x70] ss:$8 sps:$4 sm:$0xff]   ;;  %v807_v30 = vld [vmem:[#allocation7 + $0x84] ss:$8 sps:$4 sm:$0xff]   ;;  %v809_v31 = vld [vmem:[#allocation7 + $0x80] ss:$8 sps:$4 sm:$0xff]  }
  0x55   :  { %173 = vmatprep.subr.bf16.mxu0 %v777_v7  ;;  %v810_v32 = vld [vmem:[#allocation7 + $0x94] ss:$8 sps:$4 sm:$0xff]   ;;  %v812_v33 = vld [vmem:[#allocation7 + $0x90] ss:$8 sps:$4 sm:$0xff]   ;;  %v813_v34 = vld [vmem:[#allocation7 + $0xa4] ss:$8 sps:$4 sm:$0xff]  }
  0x56   :  { %v815_v35 = vld [vmem:[#allocation7 + $0xa0] ss:$8 sps:$4 sm:$0xff]   ;;  %v816_v36 = vld [vmem:[#allocation7 + $0xb4] ss:$8 sps:$4 sm:$0xff]   ;;  %v818_v37 = vld [vmem:[#allocation7 + $0xb0] ss:$8 sps:$4 sm:$0xff]  }
  0x57   :  { %421 = vmatpush1.bf16.msra.mxu1 %v791_v17  ;;  %v819_v38 = vld [vmem:[#allocation7 + $0xc4] ss:$8 sps:$4 sm:$0xff]   ;;  %v821_v39 = vld [vmem:[#allocation7 + $0xc0] ss:$8 sps:$4 sm:$0xff]   ;;  %v822_v40 = vld [vmem:[#allocation7 + $0xd4] ss:$8 sps:$4 sm:$0xff]  }
  0x58   :  { %174 = vmatpush1.bf16.msra.mxu0 %v779_v10  ;;  %422 = vmatprep.subr.bf16.mxu1 %v792_v19  ;;  %v824_v41 = vld [vmem:[#allocation7 + $0xd0] ss:$8 sps:$4 sm:$0xff]   ;;  %v825_v42 = vld [vmem:[#allocation7 + $0xe4] ss:$8 sps:$4 sm:$0xff]   ;;  %v827_v43 = vld [vmem:[#allocation7 + $0xe0] ss:$8 sps:$4 sm:$0xff]  }
  0x59   :  { %683 = vmatprep.subr.msk.bf16.mxu0 %vm160_vm0, %v780_v12  ;;  %v828_v44 = vld [vmem:[#allocation7 + $0xf4] ss:$8 sps:$4 sm:$0xff]   ;;  %v830_v45 = vld [vmem:[#allocation7 + $0xf0] ss:$8 sps:$4 sm:$0xff]   ;;  %v831_v46 = vld [vmem:[#allocation8 + $0x40] sm:$0xff]   ;;  %v100_v60 = vsub.s32 0, %v99_v59 }
  0x5a   :  { %v832_v47 = vld [vmem:[#allocation8] sm:$0xff]   ;;  %v833_v48 = vld [vmem:[#allocation8 + $0x48] sm:$0xff]   ;;  %v835_v50 = vld [vmem:[#allocation8 + $0x50] sm:$0xff]   ;;  %v104_v62 = vsub.s32 1, %v99_v59 }
  0x5b   :  { %423 = vmatpush1.bf16.msra.mxu1 %v794_v21  ;;  %v834_v49 = vld [vmem:[#allocation8 + $0x8] sm:$0xff]   ;;  %v836_v51 = vld [vmem:[#allocation8 + $0x10] sm:$0xff]   ;;  %v837_v52 = vld [vmem:[#allocation8 + $0x58] sm:$0xff]  }
  0x5c   :  { %176 = vmatpush1.bf16.msra.mxu0 %v162_v18  ;;  %424 = vmatprep.subr.bf16.mxu1 %v795_v22  ;;  %v838_v53 = vld [vmem:[#allocation8 + $0x18] sm:$0xff]   ;;  %v839_v54 = vld [vmem:[#allocation8 + $0x60] sm:$0xff]   ;;  %v841_v56 = vld [vmem:[#allocation8 + $0x68] sm:$0xff]  }
  0x5d   :  { %736 = vmatprep.subr.bf16.mxu0 %v831_v46  ;;  %v840_v55 = vld [vmem:[#allocation8 + $0x20] sm:$0xff]   ;;  %v842_v57 = vld [vmem:[#allocation8 + $0x28] sm:$0xff]   ;;  %v843_v11 = vld [vmem:[#allocation8 + $0x70] sm:$0xff]  }
  0x5e   :  { %v96_v61 = vld [vmem:[%s1104_s2] sm:$0x3]  ;;  %v844_v12 = vld [vmem:[#allocation8 + $0x30] sm:$0xff]   ;;  %v845_v13 = vld [vmem:[#allocation8 + $0x78] sm:$0xff]  }
  0x5f   :  { %684 = vmatmul.mubr.msk.bf16.vlgmr.msra.gmra.mrb[0].mxu0 %vm156_vm1, %v85_v20  ;;  %425 = vmatpush1.bf16.msra.mxu1 %v797_v23  ;;  %v101_v63 = vrot.slane %v96_v61, %v100_v60  ;;  %v105_v0 = vrot.slane %v96_v61, %v104_v62  ;;  %v846_v14 = vld [vmem:[#allocation8 + $0x38] sm:$0xff]   ;;  %v244_v15 = vld [vmem:[%s1106_s4] sm:$0x3] }
  0x60   :  { %426 = vmatprep.subr.bf16.mxu1 %v798_v24  ;;  %737 = vmatpush3.bf16.msra.mxu0 %v832_v47  ;;  %v249_v16 = vrot.slane %v244_v15, %v100_v60  ;;  %v253_v17 = vrot.slane %v244_v15, %v104_v62 }
  0x61   :  { %738 = vmatprep.subr.bf16.mxu0 %v833_v48 }
  0x63   :  { %427 = vmatpush1.bf16.msra.mxu1 %v800_v25 }
  0x64   :  { %428 = vmatprep.subr.bf16.mxu1 %v801_v26  ;;  %739 = vmatpush3.bf16.msra.mxu0 %v834_v49 }
  0x65   :  { %740 = vmatprep.subr.bf16.mxu0 %v835_v50 }
  0x67   :  { %429 = vmatpush1.bf16.msra.mxu1 %v803_v27 }
  0x68   :  { %430 = vmatprep.subr.bf16.mxu1 %v804_v28  ;;  %741 = vmatpush3.bf16.msra.mxu0 %v836_v51 }
  0x69   :  { %742 = vmatprep.subr.bf16.mxu0 %v837_v52 }
  0x6b   :  { %431 = vmatpush1.bf16.msra.mxu1 %v806_v29  ;;  %v717_v29 = vld [vmem:[%s1108_s6] ss:$0 sm:$0xff]  ;;  %s978_s6 = smov [#allocation10]  }
  0x6c   :  { %432 = vmatprep.subr.bf16.mxu1 %v807_v30  ;;  %743 = vmatpush3.bf16.msra.mxu0 %v838_v53  ;;  %s662_s14 = sshll.u32 %s978_s6, 4  ;;  %s663_s14 = int_to_ptr.vmem [resolvable:$true] %s662_s14 }
  0x6d   :  { %744 = vmatprep.subr.bf16.mxu0 %v839_v54  ;;  %s939_s17 = scalar_lea.vmem %s663_s14, 128  ;;  %p944_p5 = scmp.lt.s32.totalorder %s663_s14, %s663_s14 }
  0x6e   :  { %p940_p4 = scmp.ne.s32.totalorder %s663_s14, %s939_s17  ;;  %p945_p6 = scmp.lt.s32.totalorder %s939_s17, %s939_s17 }
  0x6f   :  { %433 = vmatpush1.bf16.msra.mxu1 %v809_v31 }
  0x70   :  { %434 = vmatprep.subr.bf16.mxu1 %v810_v32  ;;  %745 = vmatpush3.bf16.msra.mxu0 %v840_v55  ;;  %p946_p7 = por %p945_p6, %p944_p5 }
  0x71   :  { %746 = vmatprep.subr.bf16.mxu0 %v841_v56 }
  0x72   :  { %p947_p8 = pnand %p946_p7, %p940_p4 }
  0x73   :  { %435 = vmatpush1.bf16.msra.mxu1 %v812_v33 }
  0x74   :  { %436 = vmatprep.subr.bf16.mxu1 %v813_v34  ;;  %747 = vmatpush3.bf16.msra.mxu0 %v842_v57 }
  0x75   :  { %748 = vmatprep.subr.bf16.mxu0 %v843_v11 }
  0x77   :  { %437 = vmatpush1.bf16.msra.mxu1 %v815_v35 }
  0x78   :  { %438 = vmatprep.subr.bf16.mxu1 %v816_v36  ;;  %749 = vmatpush3.bf16.msra.mxu0 %v844_v12 }
  0x79   :  { %750 = vmatprep.subr.bf16.mxu0 %v845_v13 }
  0x7b   :  { %439 = vmatpush1.bf16.msra.mxu1 %v818_v37  ;;  %v735_v37 = vld [vmem:[%s1109_s7] ss:$0 sm:$0xff] }
  0x7c   :  { %440 = vmatprep.subr.bf16.mxu1 %v819_v38  ;;  %751 = vmatpush3.bf16.msra.mxu0 %v846_v14 }
  0x7f   :  { %441 = vmatpush1.bf16.msra.mxu1 %v821_v39 }
  0x80   :  { %442 = vmatprep.subr.bf16.mxu1 %v822_v40 }
  0x83   :  { %443 = vmatpush1.bf16.msra.mxu1 %v824_v41 }
  0x84   :  { %444 = vmatprep.subr.bf16.mxu1 %v825_v42 }
  0x87   :  { %445 = vmatpush1.bf16.msra.mxu1 %v827_v43 }
  0x88   :  { %446 = vmatprep.subr.bf16.mxu1 %v828_v44 }
  0x8b   :  { %447 = vmatpush1.bf16.msra.mxu1 %v830_v45 }
 0x132   :  { %v201_v1 = vpop.f32.mrb[0].mxu0 }
 0x133   :  { %v202_v2 = vadd.f32 %v201_v1, %v101_v63  ;;  %v203_v3 = vpop.f32.mrb[1].mxu0 }
 0x134   :  { %v204_v4 = vadd.f32 %v203_v3, %v105_v0  ;;  %v205_v5 = vpop.f32.mrb[2].mxu0 }
 0x135   :  { %v208_v6 = vmax.f32 %v202_v2, 0.0  ;;  %v206_v7 = vpop.f32.mrb[3].mxu0 }
 0x136   :  { %v209_v8 = vmax.f32 %v204_v4, 0.0 }
 0x137   :  { %v210_v10 = vpack.c.bf16 %v208_v6, %v208_v6 }
 0x138   :  { %v211_v9 = vpack.c.bf16 %v209_v8, %v209_v8 }
 0x13a   :  { %448 = vmatprep.mubr.bf16.mxu1 %v211_v9 }
 0x13b   :  { %449 = vmatmul.mubr.bf16.vlgmr.msra.gmra.mrb[0].mxu1 %v210_v10 }
 0x20e   :  { %v450_v18 = vpop.f32.mrb[0].mxu1 }
 0x20f   :  { %v451_v19 = vadd.f32 %v450_v18, %v249_v16  ;;  %v452_v20 = vpop.f32.mrb[1].mxu1 }
 0x210   :  { %v453_v21 = vadd.f32 %v452_v20, %v253_v17  ;;  %v454_v22 = vpop.f32.mrb[2].mxu1 }
 0x211   :  { %v457_v23 = vmax.f32 %v451_v19, 0.0  ;;  %v455_v24 = vpop.f32.mrb[3].mxu1 }
 0x212   :  { %v458_v25 = vmax.f32 %v453_v21, 0.0 }
 0x213   :  { %v459_v27 = vpack.c.bf16 %v457_v23, %v457_v23 }
 0x214   :  { %v460_v26 = vpack.c.bf16 %v458_v25, %v458_v25 }
 0x216   :  { %628 = vmatprep.mubr.bf16.mxu0 %v460_v26 }
 0x217   :  { %629 = vmatmul.mubr.bf16.vlgmr.msra.gmra.mrb[4].mxu0 %v459_v27 }
 0x2ea   :  { %v752_v28 = vpop.f32.mrb[4].mxu0 }
 0x2eb   :  { %v753_v30 = vpop.f32.mrb[5].mxu0 }
 0x2ec   :  { %v754_v31 = vadd.f32 %v753_v30, %v752_v28  ;;  %v755_v32 = vpop.f32.mrb[6].mxu0 }
 0x2ed   :  { %v756_v33 = vpop.f32.mrb[7].mxu0 }
 0x2ee   :  { %v631_v34 = vadd.f32 %v754_v31, %v717_v29 }
 0x2f0   :  { %v734_v35 = vclamps-f32 %v631_v34, 20.0 }
 0x2f2   :  { %v638_v36 = vmul.f32 1.442695, %v734_v35 }
 0x2f4   :  { %847 = vpow2.f32 %v638_v36 }
 0x2fe   :  { %v848_v38 = vpop.eup %847 }
 0x2ff   :  { %v647_v39 = vmul.f32 %v848_v38, %v735_v37 }
 0x301   :  { %648 = vadd.xlane.f32.xlu0 %v647_v39 }
 0x38e   :  { %v649_v40 = vpop.xlane.xlu0 %648 }
 0x38f   :  { %849 = vrcp.f32 %v649_v40 }
 0x399   :  { %v850_v41 = vpop.eup %849 }
 0x39a   :  { %v651_v42 = vmul.f32 %v850_v41, %v649_v40 }
 0x39c   :  { %v652_v43 = vsub.f32 2.0, %v651_v42 }
 0x39e   :  { %v653_v44 = vmul.f32 %v850_v41, %v652_v43 }
 0x3a0   :  { %v654_v45 = vmul.f32 %v653_v44, %v647_v39 }
 0x3a2   :  { %655 = vst [vmem:[#allocation10] sm:$0xff] %v654_v45 }
 0x3a3   :  { %950 = shalt.err (!%p947_p8)
}
 0x3a4   :  { %s951_s19 = scalar_lea.hbm %s1110_s8, 128 }
 0x3a5   :  { %p952_p9 = scmp.ne.s32.totalorder %s1110_s8, %s951_s19  ;;  %p955_p10 = scmp.lt.u32.totalorder %s951_s19, %s1110_s8 }
 0x3a7   :  { %p957_p11 = pnand %p955_p10, %p952_p9 }
 0x3a9   :  { %960 = shalt.err (!%p957_p11)
}
 0x3aa   :  { %665 = dma.vmem_to_hbm [thread:$0]  %s663_s14, 128, %s1110_s8, [#allocation4]  }
 0x3ab   :  { %967 = dma.done.wait [#allocation4], 128  }
 0x3ac   :  { %968 = vsyncadd [#allocation4], 4294967168 }
 0x3ad   :  { %669 = vsyncpa [#allocation3], 1 }
 0x3ae   :  { %670 = vsyncpa [#allocation6], 1 }
 0x3af   :  { %671 = vsyncpa [#allocation9], 1 }
 0x3b0   :  { %672 = vsyncpa [#allocation4], 1 }

</bundles_post_ra>
